<compile_context>
chip_gen: v5e
topology: v5e:2x2
jax: 0.10.0
libtpu: 0.0.40
codegen_flags: <defaults>
</compile_context>

<pallas_src>
import functools

import jax
import jax.numpy as jnp
from jax.experimental import pallas as pl
from jax.experimental.pallas import tpu as pltpu


def _round_up(x: int, m: int) -> int:
    return ((x + m - 1) // m) * m


_VMEM_LIMIT_BYTES = 48 * 1024 * 1024   # < v7x physical 64 MiB, fine on v5e/v6e
_RESIDENT_BUDGET_BYTES = 32 * 1024 * 1024


# --------------------------------------------------------------------------- #
# Resident-W path: one matmul per row tile, W/bias stay in VMEM for all steps.
# --------------------------------------------------------------------------- #
def _resident_kernel(x_ref, w_ref, b_ref, o_ref, *, use_bf16):
    x = x_ref[...]
    w = w_ref[...]
    if use_bf16:
        x = x.astype(jnp.bfloat16)
        w = w.astype(jnp.bfloat16)
    y = jnp.dot(x, w, preferred_element_type=jnp.float32)  # MXU, f32 accumulate
    y = y + b_ref[...]                                      # f32 bias, bcast rows
    o_ref[...] = jnp.maximum(y, 0.0).astype(o_ref.dtype)


def _relu_linear_resident(x2d, w, b, out_dtype, tm, use_bf16):
    n, cin = x2d.shape
    cout = w.shape[1]

    # Row tile: multiple of 16 (bf16 sublane packing), no K / Cout padding.
    tm_e = max(16, min(_round_up(tm, 16), _round_up(n, 16)))
    n_p = _round_up(n, tm_e)
    x_p = jnp.pad(x2d, ((0, n_p - n), (0, 0))) if n_p != n else x2d
    b2 = b.astype(jnp.float32).reshape(1, cout)

    grid = (n_p // tm_e,)
    out_bytes = jnp.dtype(out_dtype).itemsize
    cost = pl.CostEstimate(
        flops=2 * n_p * cin * cout,
        transcendentals=0,
        bytes_accessed=(x_p.size * x_p.dtype.itemsize
                        + w.size * w.dtype.itemsize
                        + b2.size * 4
                        + n_p * cout * out_bytes),
    )

    out_p = pl.pallas_call(
        functools.partial(_resident_kernel, use_bf16=use_bf16),
        out_shape=jax.ShapeDtypeStruct((n_p, cout), out_dtype),
        grid_spec=pltpu.PrefetchScalarGridSpec(
            num_scalar_prefetch=0,
            grid=grid,
            in_specs=[
                pl.BlockSpec((tm_e, cin), lambda i: (i, 0)),   # x row tile, full K
                pl.BlockSpec((cin, cout), lambda i: (0, 0)),   # full W, resident
                pl.BlockSpec((1, cout), lambda i: (0, 0)),     # full bias, resident
            ],
            out_specs=pl.BlockSpec((tm_e, cout), lambda i: (i, 0)),
        ),
        compiler_params=pltpu.CompilerParams(
            dimension_semantics=("parallel",),
            vmem_limit_bytes=_VMEM_LIMIT_BYTES,
        ),
        cost_estimate=cost,
    )(x_p, w, b2)

    return out_p[:n] if n_p != n else out_p


# --------------------------------------------------------------------------- #
# General tiled fallback (W too large for VMEM): M/N/K grid, f32 accumulator.
# --------------------------------------------------------------------------- #
def _tiled_kernel(x_ref, w_ref, b_ref, o_ref, acc_ref, *, use_bf16):
    k = pl.program_id(2)

    @pl.when(k == 0)
    def _init():
        acc_ref[...] = jnp.zeros_like(acc_ref)

    x = x_ref[...]
    w = w_ref[...]
    if use_bf16:
        x = x.astype(jnp.bfloat16)
        w = w.astype(jnp.bfloat16)
    acc_ref[...] += jnp.dot(x, w, preferred_element_type=jnp.float32)

    @pl.when(k == pl.num_programs(2) - 1)
    def _finalize():
        y = acc_ref[...] + b_ref[...]
        o_ref[...] = jnp.maximum(y, 0.0).astype(o_ref.dtype)


def _relu_linear_tiled(x2d, w, b, out_dtype, tm, tn, tk, use_bf16):
    n, cin = x2d.shape
    cout = w.shape[1]

    tm_e = max(16, min(_round_up(tm, 16), _round_up(n, 16)))
    tk_e = cin if cin <= tk else tk                      # K unpadded when small
    tn_e = min(_round_up(tn, 128), _round_up(cout, 128))

    n_p = _round_up(n, tm_e)
    cin_p = _round_up(cin, tk_e)
    cout_p = _round_up(cout, tn_e)

    x_p = jnp.pad(x2d, ((0, n_p - n), (0, cin_p - cin)))
    w_p = jnp.pad(w, ((0, cin_p - cin), (0, cout_p - cout)))
    b_p = jnp.pad(b.astype(jnp.float32), (0, cout_p - cout)).reshape(1, cout_p)

    grid = (n_p // tm_e, cout_p // tn_e, cin_p // tk_e)
    out_bytes = jnp.dtype(out_dtype).itemsize
    cost = pl.CostEstimate(
        flops=2 * n_p * cin_p * cout_p,
        transcendentals=0,
        bytes_accessed=(x_p.size * x_p.dtype.itemsize * grid[1]
                        + w_p.size * w_p.dtype.itemsize * grid[0]
                        + b_p.size * 4
                        + n_p * cout_p * out_bytes),
    )

    out_p = pl.pallas_call(
        functools.partial(_tiled_kernel, use_bf16=use_bf16),
        out_shape=jax.ShapeDtypeStruct((n_p, cout_p), out_dtype),
        grid_spec=pltpu.PrefetchScalarGridSpec(
            num_scalar_prefetch=0,
            grid=grid,
            in_specs=[
                pl.BlockSpec((tm_e, tk_e), lambda i, j, k: (i, k)),
                pl.BlockSpec((tk_e, tn_e), lambda i, j, k: (k, j)),
                pl.BlockSpec((1, tn_e), lambda i, j, k: (0, j)),
            ],
            out_specs=pl.BlockSpec((tm_e, tn_e), lambda i, j, k: (i, j)),
            scratch_shapes=[pltpu.VMEM((tm_e, tn_e), jnp.float32)],
        ),
        compiler_params=pltpu.CompilerParams(
            dimension_semantics=("parallel", "parallel", "arbitrary"),
            vmem_limit_bytes=_VMEM_LIMIT_BYTES,
        ),
        cost_estimate=cost,
    )(x_p, w_p, b_p)

    return out_p[:n, :cout]


# --------------------------------------------------------------------------- #
# Public wrapper: relu(x @ W + b) with x of shape (..., Cin).
# --------------------------------------------------------------------------- #
@functools.partial(jax.jit, static_argnames=("tm", "tn", "tk", "use_bf16"))
def relu_layer(x, w, b=None, *, tm=512, tn=256, tk=512, use_bf16=True):
    cin, cout = w.shape
    lead = x.shape[:-1]
    assert x.shape[-1] == cin
    if b is None:
        b = jnp.zeros((cout,), jnp.float32)

    x2d = x.reshape(-1, cin)
    n = x2d.shape[0]
    out_dtype = x.dtype

    # Does the whole (un-padded) W + bias + double-buffered x/out tiles fit VMEM?
    tm_e = max(16, min(_round_up(tm, 16), _round_up(n, 16)))
    resident_bytes = 2 * (tm_e * cin + cin * cout + cout + tm_e * cout) * 4
    if resident_bytes <= _RESIDENT_BUDGET_BYTES:
        out2d = _relu_linear_resident(x2d, w, b, out_dtype, tm, use_bf16)
    else:
        out2d = _relu_linear_tiled(x2d, w, b, out_dtype, tm, tn, tk, use_bf16)

    return out2d.reshape(*lead, cout)


def init_relu_layer_params(key, in_channels, out_channels):
    """Deterministic init mirroring nn.Linear's default uniform(-k, k), k=1/sqrt(in)."""
    kw, kb = jax.random.split(key)
    bound = 1.0 / jnp.sqrt(jnp.float32(in_channels))
    # stored as (in, out) for the kernel's x @ W layout
    w = jax.random.uniform(kw, (in_channels, out_channels), jnp.float32, -bound, bound)
    b = jax.random.uniform(kb, (out_channels,), jnp.float32, -bound, bound)
    return w, b


# TODO(synk): for full INR MLPs, fusing several consecutive Linear+ReLU layers
# into one pallas_call (all layer weights resident in VMEM) is the next step;
# this kernel covers the single ReLULayer forward.

if __name__ == "__main__":
    key = jax.random.PRNGKey(0)
    kx, kp = jax.random.split(key)

    in_channels, out_channels = 32, 64
    batch, n_coords = 2, 256          # (B, N, Cin) coordinate batch for an INR layer

    x = jax.random.normal(kx, (batch, n_coords, in_channels), jnp.float32)
    w, b = init_relu_layer_params(kp, in_channels, out_channels)

    # Fast path: bf16 operands on the MXU (cast in-kernel), f32 accumulate/epilogue.
    out = relu_layer(x, w, b)
    out = jax.block_until_ready(out)

    # Exact-semantics path (f32 operands) for a tight correctness check.
    out_f32 = relu_layer(x, w, b, use_bf16=False)
    out_f32 = jax.block_until_ready(out_f32)

    # References.
    ref_f32 = jnp.maximum(jnp.einsum("bnc,cd->bnd", x, w) + b, 0.0)
    xb = x.astype(jnp.bfloat16).astype(jnp.float32)
    wb = w.astype(jnp.bfloat16).astype(jnp.float32)
    ref_bf16 = jnp.maximum(jnp.einsum("bnc,cd->bnd", xb, wb) + b, 0.0)

    assert out.shape == (batch, n_coords, out_channels)
    assert out_f32.shape == (batch, n_coords, out_channels)
    assert jnp.allclose(out_f32, ref_f32, atol=1e-5, rtol=1e-5)
    assert jnp.allclose(out, ref_bf16, atol=1e-3, rtol=1e-3)
    assert jnp.allclose(out, ref_f32, atol=5e-2, rtol=5e-2)

    print("KERNEL_OK")
</pallas_src>

<mosaic_0001>
module attributes {stable_mosaic.version = 11 : i64} {
  func.func @_resident_kernel(%arg0: i32, %arg1: memref<512x32xf32, #tpu.memory_space<vmem>>, %arg2: memref<32x64xf32, #tpu.memory_space<vmem>>, %arg3: memref<1x64xf32, #tpu.memory_space<vmem>>, %arg4: memref<512x64xf32, #tpu.memory_space<vmem>>) attributes {dimension_semantics = [#tpu.dimension_semantics<parallel>], iteration_bounds = array<i64: 1>, scalar_prefetch = 0 : i64, scratch_operands = 0 : i64, tpu.core_type = #tpu.core_type<tc>, window_params = [{transform_indices = @transform_0, window_bounds = array<i64: 512, 32>}, {pipeline_mode = #tpu.pipeline_mode<synchronous>, transform_indices = @transform_1, window_bounds = array<i64: 32, 64>}, {pipeline_mode = #tpu.pipeline_mode<synchronous>, transform_indices = @transform_2, window_bounds = array<i64: 1, 64>}, {transform_indices = @transform_3, window_bounds = array<i64: 512, 64>}]} {
    %c0 = arith.constant 0 : index
    %c0_0 = arith.constant 0 : index
    %0 = vector.load %arg1[%c0, %c0_0] : memref<512x32xf32, #tpu.memory_space<vmem>>, vector<512x32xf32>
    %c0_1 = arith.constant 0 : index
    %c0_2 = arith.constant 0 : index
    %1 = vector.load %arg2[%c0_1, %c0_2] : memref<32x64xf32, #tpu.memory_space<vmem>>, vector<32x64xf32>
    %2 = arith.truncf %0 : vector<512x32xf32> to vector<512x32xbf16>
    %3 = arith.truncf %1 : vector<32x64xf32> to vector<32x64xbf16>
    %cst = arith.constant dense<0.000000e+00> : vector<512x64xf32>
    %4 = tpu.matmul %2, %3, %cst {dimension_numbers = #tpu.dot_dimension_numbers<[1], [0], [0], [1], [0, 0, 1, 1], [], []>} : vector<512x32xbf16>, vector<32x64xbf16>, vector<512x64xf32> -> vector<512x64xf32>
    %c0_3 = arith.constant 0 : index
    %c0_4 = arith.constant 0 : index
    %5 = vector.load %arg3[%c0_3, %c0_4] : memref<1x64xf32, #tpu.memory_space<vmem>>, vector<1x64xf32>
    %6 = vector.broadcast %5 : vector<1x64xf32> to vector<512x64xf32>
    %7 = arith.addf %4, %6 : vector<512x64xf32>
    %cst_5 = arith.constant 0.000000e+00 : f32
    %8 = vector.broadcast %cst_5 : f32 to vector<512x64xf32>
    %9 = arith.maximumf %7, %8 : vector<512x64xf32>
    %c0_6 = arith.constant 0 : index
    %c0_7 = arith.constant 0 : index
    %10 = vector.load %arg4[%c0_6, %c0_7] : memref<512x64xf32, #tpu.memory_space<vmem>>, vector<512x64xf32>
    tpu.vector_store %arg4[%c0_6, %c0_7], %9 {strides = array<i32>} : memref<512x64xf32, #tpu.memory_space<vmem>>, vector<512x64xf32>,
    return
  }
  func.func @transform_0(%arg0: i32) -> (i32, i32) {
    %c0_i32 = arith.constant 0 : i32
    %c0_i32_0 = arith.constant 0 : i32
    return %arg0, %c0_i32 : i32, i32
  }
  func.func @transform_1(%arg0: i32) -> (i32, i32) {
    %c0_i32 = arith.constant 0 : i32
    %c0_i32_0 = arith.constant 0 : i32
    %c0_i32_1 = arith.constant 0 : i32
    return %c0_i32, %c0_i32_0 : i32, i32
  }
  func.func @transform_2(%arg0: i32) -> (i32, i32) {
    %c0_i32 = arith.constant 0 : i32
    %c0_i32_0 = arith.constant 0 : i32
    %c0_i32_1 = arith.constant 0 : i32
    return %c0_i32, %c0_i32_0 : i32, i32
  }
  func.func @transform_3(%arg0: i32) -> (i32, i32) {
    %c0_i32 = arith.constant 0 : i32
    %c0_i32_0 = arith.constant 0 : i32
    return %arg0, %c0_i32 : i32, i32
  }
}

</mosaic_0001>

<bundles_post_ra>
// kernel: relu_layer.1
= control target key start
LH: loop header
LB: loop body
LE: loop exit
PB: predicated region body
PF: predicated region fallthrough
CT: control target
= control target key end

     0   :  { %vm121_vm0 = vcmask 261120   ;;  %vm451_vm1 = vcmask 523264   ;;  %s1140_s1 = inlined_call_operand.vmem [shape: f32[32,64], index: 1, kind: input, shape index: {}]   ;;  %s1141_s0 = inlined_call_operand.vmem [shape: f32[512,32], index: 0, kind: input, shape index: {}]   ;;  %s1142_s2 = inlined_call_operand.vmem [shape: f32[1,64], index: 2, kind: input, shape index: {}]   ;;  %s1143_s3 = inlined_call_operand.vmem [shape: f32[512,64], index: 3, kind: output, shape index: {}]  }
   0x1   :  { %v81_v0 = vld [vmem:[%s1140_s1 + $0x10] sm:$0xff]  ;;  %v82_v1 = vld [vmem:[%s1140_s1 + $0x18] sm:$0xff]  ;;  %v79_v2 = vld [vmem:[%s1140_s1] sm:$0xff] }
   0x2   :  { %v116_v3 = vpack.c.bf16 %v82_v1, %v81_v0  ;;  %v80_v4 = vld [vmem:[%s1140_s1 + $0x8] sm:$0xff]  ;;  %v15_v5 = vld [vmem:[%s1141_s0] sm:$0xff]  ;;  %v17_v18 = vld [vmem:[%s1141_s0 + $0x10] sm:$0xff] }
   0x3   :  { %v16_v6 = vld [vmem:[%s1141_s0 + $0x8] sm:$0xff]  ;;  %v115_v7 = vpack.c.bf16 %v80_v4, %v79_v2  ;;  %v31_v8 = vld [vmem:[%s1141_s0 + $0x80] sm:$0xff]  ;;  %v18_v19 = vld [vmem:[%s1141_s0 + $0x18] sm:$0xff] }
   0x4   :  { %224 = vmatpush.bf16.msra.mxu0 %v116_v3  ;;  %552 = vmatpush.bf16.msra.mxu1 %v116_v3  ;;  %v32_v9 = vld [vmem:[%s1141_s0 + $0x88] sm:$0xff]  ;;  %v47_v10 = vld [vmem:[%s1141_s0 + $0x100] sm:$0xff]  ;;  %v83_v14 = vpack.c.bf16 %v16_v6, %v15_v5  ;;  %v33_v20 = vld [vmem:[%s1141_s0 + $0x90] sm:$0xff]  ;;  %v84_v26 = vpack.c.bf16 %v18_v19, %v17_v18 }
   0x5   :  { %553 = vmatpush.bf16.msra.mxu2 %v116_v3  ;;  %554 = vmatpush.bf16.msra.mxu3 %v116_v3  ;;  %v48_v11 = vld [vmem:[%s1141_s0 + $0x108] sm:$0xff]  ;;  %v63_v12 = vld [vmem:[%s1141_s0 + $0x180] sm:$0xff]  ;;  %v91_v15 = vpack.c.bf16 %v32_v9, %v31_v8  ;;  %v34_v21 = vld [vmem:[%s1141_s0 + $0x98] sm:$0xff] }
   0x6   :  { %v64_v13 = vld [vmem:[%s1141_s0 + $0x188] sm:$0xff]  ;;  %v99_v16 = vpack.c.bf16 %v48_v11, %v47_v10  ;;  %v49_v22 = vld [vmem:[%s1141_s0 + $0x110] sm:$0xff]  ;;  %v50_v23 = vld [vmem:[%s1141_s0 + $0x118] sm:$0xff]  ;;  %v92_v27 = vpack.c.bf16 %v34_v21, %v33_v20 }
   0x7   :  { %v107_v17 = vpack.c.bf16 %v64_v13, %v63_v12  ;;  %v65_v24 = vld [vmem:[%s1141_s0 + $0x190] sm:$0xff]  ;;  %v66_v25 = vld [vmem:[%s1141_s0 + $0x198] sm:$0xff]  ;;  %v100_v28 = vpack.c.bf16 %v50_v23, %v49_v22  ;;  %v19_v30 = vld [vmem:[%s1141_s0 + $0x20] sm:$0xff] }
   0x8   :  { %225 = vmatpush.bf16.msra.mxu0 %v115_v7  ;;  %555 = vmatpush.bf16.msra.mxu1 %v115_v7  ;;  %v108_v29 = vpack.c.bf16 %v66_v25, %v65_v24  ;;  %v20_v31 = vld [vmem:[%s1141_s0 + $0x28] sm:$0xff]  ;;  %v35_v32 = vld [vmem:[%s1141_s0 + $0xa0] sm:$0xff]  ;;  %v21_v42 = vld [vmem:[%s1141_s0 + $0x30] sm:$0xff] }
   0x9   :  { %556 = vmatpush.bf16.msra.mxu2 %v115_v7  ;;  %557 = vmatpush.bf16.msra.mxu3 %v115_v7  ;;  %v36_v33 = vld [vmem:[%s1141_s0 + $0xa8] sm:$0xff]  ;;  %v51_v34 = vld [vmem:[%s1141_s0 + $0x120] sm:$0xff]  ;;  %v85_v38 = vpack.c.bf16 %v20_v31, %v19_v30  ;;  %v22_v43 = vld [vmem:[%s1141_s0 + $0x38] sm:$0xff] }
   0xa   :  { %v52_v35 = vld [vmem:[%s1141_s0 + $0x128] sm:$0xff]  ;;  %v67_v36 = vld [vmem:[%s1141_s0 + $0x1a0] sm:$0xff]  ;;  %v93_v39 = vpack.c.bf16 %v36_v33, %v35_v32  ;;  %v37_v44 = vld [vmem:[%s1141_s0 + $0xb0] sm:$0xff]  ;;  %v86_v50 = vpack.c.bf16 %v22_v43, %v21_v42 }
   0xb   :  { %520 = vmatmul.msk.bf16.vlgmr.msra.gmra.mxu0 %vm121_vm0, %v83_v14  ;;  %528 = vmatmul.msk.bf16.vlgmr.msra.gmra.mxu1 %vm121_vm0, %v91_v15  ;;  %v68_v37 = vld [vmem:[%s1141_s0 + $0x1a8] sm:$0xff]  ;;  %v101_v40 = vpack.c.bf16 %v52_v35, %v51_v34  ;;  %v38_v45 = vld [vmem:[%s1141_s0 + $0xb8] sm:$0xff]  ;;  %v53_v46 = vld [vmem:[%s1141_s0 + $0x130] sm:$0xff] }
   0xc   :  { %536 = vmatmul.msk.bf16.vlgmr.msra.gmra.mxu2 %vm121_vm0, %v99_v16  ;;  %544 = vmatmul.msk.bf16.vlgmr.msra.gmra.mxu3 %vm121_vm0, %v107_v17  ;;  %v109_v41 = vpack.c.bf16 %v68_v37, %v67_v36  ;;  %v54_v47 = vld [vmem:[%s1141_s0 + $0x138] sm:$0xff]  ;;  %v69_v48 = vld [vmem:[%s1141_s0 + $0x1b0] sm:$0xff]  ;;  %v94_v51 = vpack.c.bf16 %v38_v45, %v37_v44  ;;  %v23_v54 = vld [vmem:[%s1141_s0 + $0x40] sm:$0xff] }
   0xd   :  { %v70_v49 = vld [vmem:[%s1141_s0 + $0x1b8] sm:$0xff]  ;;  %v102_v52 = vpack.c.bf16 %v54_v47, %v53_v46  ;;  %v24_v55 = vld [vmem:[%s1141_s0 + $0x48] sm:$0xff]  ;;  %v39_v56 = vld [vmem:[%s1141_s0 + $0xc0] sm:$0xff] }
   0xe   :  { %v110_v53 = vpack.c.bf16 %v70_v49, %v69_v48  ;;  %v40_v57 = vld [vmem:[%s1141_s0 + $0xc8] sm:$0xff]  ;;  %v55_v58 = vld [vmem:[%s1141_s0 + $0x140] sm:$0xff]  ;;  %v87_v62 = vpack.c.bf16 %v24_v55, %v23_v54  ;;  %v25_v2 = vld [vmem:[%s1141_s0 + $0x50] sm:$0xff] }
   0xf   :  { %v56_v59 = vld [vmem:[%s1141_s0 + $0x148] sm:$0xff]  ;;  %v71_v60 = vld [vmem:[%s1141_s0 + $0x1c0] sm:$0xff]  ;;  %v95_v63 = vpack.c.bf16 %v40_v57, %v39_v56  ;;  %v26_v3 = vld [vmem:[%s1141_s0 + $0x58] sm:$0xff] }
  0x10   :  { %v72_v61 = vld [vmem:[%s1141_s0 + $0x1c8] sm:$0xff]  ;;  %v103_v0 = vpack.c.bf16 %v56_v59, %v55_v58  ;;  %v41_v4 = vld [vmem:[%s1141_s0 + $0xd0] sm:$0xff]  ;;  %v42_v5 = vld [vmem:[%s1141_s0 + $0xd8] sm:$0xff]  ;;  %v88_v10 = vpack.c.bf16 %v26_v3, %v25_v2 }
  0x11   :  { %v111_v1 = vpack.c.bf16 %v72_v61, %v71_v60  ;;  %v57_v6 = vld [vmem:[%s1141_s0 + $0x150] sm:$0xff]  ;;  %v58_v7 = vld [vmem:[%s1141_s0 + $0x158] sm:$0xff]  ;;  %v96_v11 = vpack.c.bf16 %v42_v5, %v41_v4  ;;  %v27_v14 = vld [vmem:[%s1141_s0 + $0x60] sm:$0xff] }
  0x12   :  { %v73_v8 = vld [vmem:[%s1141_s0 + $0x1d0] sm:$0xff]  ;;  %v74_v9 = vld [vmem:[%s1141_s0 + $0x1d8] sm:$0xff]  ;;  %v104_v12 = vpack.c.bf16 %v58_v7, %v57_v6  ;;  %v28_v15 = vld [vmem:[%s1141_s0 + $0x68] sm:$0xff] }
  0x13   :  { %v112_v13 = vpack.c.bf16 %v74_v9, %v73_v8  ;;  %v43_v16 = vld [vmem:[%s1141_s0 + $0xe0] sm:$0xff]  ;;  %v44_v17 = vld [vmem:[%s1141_s0 + $0xe8] sm:$0xff]  ;;  %v89_v22 = vpack.c.bf16 %v28_v15, %v27_v14  ;;  %v61_v30 = vld [vmem:[%s1141_s0 + $0x170] sm:$0xff] }
  0x14   :  { %v59_v18 = vld [vmem:[%s1141_s0 + $0x160] sm:$0xff]  ;;  %v60_v19 = vld [vmem:[%s1141_s0 + $0x168] sm:$0xff]  ;;  %v97_v23 = vpack.c.bf16 %v44_v17, %v43_v16  ;;  %v62_v31 = vld [vmem:[%s1141_s0 + $0x178] sm:$0xff] }
  0x15   :  { %v75_v20 = vld [vmem:[%s1141_s0 + $0x1e0] sm:$0xff]  ;;  %v76_v21 = vld [vmem:[%s1141_s0 + $0x1e8] sm:$0xff]  ;;  %v105_v24 = vpack.c.bf16 %v60_v19, %v59_v18  ;;  %v77_v32 = vld [vmem:[%s1141_s0 + $0x1f0] sm:$0xff]  ;;  %v106_v36 = vpack.c.bf16 %v62_v31, %v61_v30 }
  0x16   :  { %v113_v25 = vpack.c.bf16 %v76_v21, %v75_v20  ;;  %v78_v33 = vld [vmem:[%s1141_s0 + $0x1f8] sm:$0xff] }
  0x17   :  { %v114_v37 = vpack.c.bf16 %v78_v33, %v77_v32 }
  0x1b   :  { %521 = vmatmul.msk.bf16.gmra.mxu0 %vm121_vm0, %v84_v26  ;;  %529 = vmatmul.msk.bf16.gmra.mxu1 %vm121_vm0, %v92_v27  ;;  %v29_v26 = vld [vmem:[%s1141_s0 + $0x70] sm:$0xff]  ;;  %v30_v27 = vld [vmem:[%s1141_s0 + $0x78] sm:$0xff] }
  0x1c   :  { %537 = vmatmul.msk.bf16.gmra.mxu2 %vm121_vm0, %v100_v28  ;;  %545 = vmatmul.msk.bf16.gmra.mxu3 %vm121_vm0, %v108_v29  ;;  %v45_v28 = vld [vmem:[%s1141_s0 + $0xf0] sm:$0xff]  ;;  %v46_v29 = vld [vmem:[%s1141_s0 + $0xf8] sm:$0xff]  ;;  %v90_v34 = vpack.c.bf16 %v30_v27, %v29_v26 }
  0x1d   :  { %v98_v35 = vpack.c.bf16 %v46_v29, %v45_v28 }
  0x2b   :  { %522 = vmatmul.msk.bf16.gmra.mxu0 %vm121_vm0, %v85_v38  ;;  %530 = vmatmul.msk.bf16.gmra.mxu1 %vm121_vm0, %v93_v39  ;;  %v818_v38 = vld [vmem:[%s1142_s2] ss:$0 sm:$0xff] }
  0x2c   :  { %538 = vmatmul.msk.bf16.gmra.mxu2 %vm121_vm0, %v101_v40  ;;  %546 = vmatmul.msk.bf16.gmra.mxu3 %vm121_vm0, %v109_v41 }
  0x3b   :  { %523 = vmatmul.msk.bf16.gmra.mxu0 %vm121_vm0, %v86_v50  ;;  %531 = vmatmul.msk.bf16.gmra.mxu1 %vm121_vm0, %v94_v51 }
  0x3c   :  { %539 = vmatmul.msk.bf16.gmra.mxu2 %vm121_vm0, %v102_v52  ;;  %547 = vmatmul.msk.bf16.gmra.mxu3 %vm121_vm0, %v110_v53 }
  0x4b   :  { %524 = vmatmul.msk.bf16.gmra.mxu0 %vm121_vm0, %v87_v62  ;;  %532 = vmatmul.msk.bf16.gmra.mxu1 %vm121_vm0, %v95_v63 }
  0x4c   :  { %540 = vmatmul.msk.bf16.gmra.mxu2 %vm121_vm0, %v103_v0  ;;  %548 = vmatmul.msk.bf16.gmra.mxu3 %vm121_vm0, %v111_v1 }
  0x5b   :  { %525 = vmatmul.msk.bf16.gmra.mxu0 %vm121_vm0, %v88_v10  ;;  %533 = vmatmul.msk.bf16.gmra.mxu1 %vm121_vm0, %v96_v11 }
  0x5c   :  { %541 = vmatmul.msk.bf16.gmra.mxu2 %vm121_vm0, %v104_v12  ;;  %549 = vmatmul.msk.bf16.gmra.mxu3 %vm121_vm0, %v112_v13 }
  0x6b   :  { %526 = vmatmul.msk.bf16.gmra.mxu0 %vm121_vm0, %v89_v22  ;;  %534 = vmatmul.msk.bf16.gmra.mxu1 %vm121_vm0, %v97_v23 }
  0x6c   :  { %542 = vmatmul.msk.bf16.gmra.mxu2 %vm121_vm0, %v105_v24  ;;  %550 = vmatmul.msk.bf16.gmra.mxu3 %vm121_vm0, %v113_v25 }
  0x7b   :  { %527 = vmatmul.msk.bf16.gmra.mxu0 %vm121_vm0, %v90_v34  ;;  %535 = vmatmul.msk.bf16.gmra.mxu1 %vm121_vm0, %v98_v35 }
  0x7c   :  { %543 = vmatmul.msk.bf16.gmra.mxu2 %vm121_vm0, %v106_v36  ;;  %551 = vmatmul.msk.bf16.gmra.mxu3 %vm121_vm0, %v114_v37 }
  0x88   :  { %v227_v39 = vpop.f32.mrf.mxu0  ;;  %v267_v40 = vpop.f32.mrf.mxu1 }
  0x89   :  { %v228_v41 = vadd.f32 %v818_v38, %v227_v39  ;;  %v268_v42 = vadd.f32 %v818_v38, %v267_v40 }
  0x8b   :  { %v387_v43 = vmax.f32 %v228_v41, 0.0  ;;  %v403_v44 = vmax.f32 %v268_v42, 0.0 }
  0x8d   :  { %452 = vst.msk [vmem:[%s1143_s3] sm:$0xff] %vm451_vm1, %v387_v43 }
  0x8e   :  { %468 = vst.msk [vmem:[%s1143_s3 + $0x80] sm:$0xff] %vm451_vm1, %v403_v44 }
  0x8f   :  { %v307_v45 = vpop.f32.mrf.mxu2  ;;  %v347_v46 = vpop.f32.mrf.mxu3 }
  0x90   :  { %v308_v47 = vadd.f32 %v818_v38, %v307_v45  ;;  %v348_v48 = vadd.f32 %v818_v38, %v347_v46  ;;  %v229_v49 = vpop.f32.mrf.mxu0  ;;  %v269_v50 = vpop.f32.mrf.mxu1 }
  0x91   :  { %v230_v51 = vadd.f32 %v818_v38, %v229_v49  ;;  %v270_v52 = vadd.f32 %v818_v38, %v269_v50 }
  0x92   :  { %v419_v53 = vmax.f32 %v308_v47, 0.0  ;;  %v435_v54 = vmax.f32 %v348_v48, 0.0 }
  0x93   :  { %v388_v55 = vmax.f32 %v230_v51, 0.0  ;;  %v404_v56 = vmax.f32 %v270_v52, 0.0 }
  0x94   :  { %484 = vst.msk [vmem:[%s1143_s3 + $0x100] sm:$0xff] %vm451_vm1, %v419_v53 }
  0x95   :  { %500 = vst.msk [vmem:[%s1143_s3 + $0x180] sm:$0xff] %vm451_vm1, %v435_v54 }
  0x96   :  { %453 = vst.msk [vmem:[%s1143_s3 + $0x8] sm:$0xff] %vm451_vm1, %v388_v55 }
  0x97   :  { %469 = vst.msk [vmem:[%s1143_s3 + $0x88] sm:$0xff] %vm451_vm1, %v404_v56  ;;  %v309_v57 = vpop.f32.mrf.mxu2  ;;  %v349_v58 = vpop.f32.mrf.mxu3 }
  0x98   :  { %v310_v59 = vadd.f32 %v818_v38, %v309_v57  ;;  %v350_v60 = vadd.f32 %v818_v38, %v349_v58  ;;  %v232_v61 = vpop.f32.mrf.mxu0  ;;  %v272_v62 = vpop.f32.mrf.mxu1 }
  0x99   :  { %v233_v63 = vadd.f32 %v818_v38, %v232_v61  ;;  %v273_v0 = vadd.f32 %v818_v38, %v272_v62 }
  0x9a   :  { %v420_v1 = vmax.f32 %v310_v59, 0.0  ;;  %v436_v2 = vmax.f32 %v350_v60, 0.0 }
  0x9b   :  { %v389_v3 = vmax.f32 %v233_v63, 0.0  ;;  %v405_v4 = vmax.f32 %v273_v0, 0.0 }
  0x9c   :  { %485 = vst.msk [vmem:[%s1143_s3 + $0x108] sm:$0xff] %vm451_vm1, %v420_v1 }
  0x9d   :  { %501 = vst.msk [vmem:[%s1143_s3 + $0x188] sm:$0xff] %vm451_vm1, %v436_v2 }
  0x9e   :  { %454 = vst.msk [vmem:[%s1143_s3 + $0x10] sm:$0xff] %vm451_vm1, %v389_v3 }
  0x9f   :  { %470 = vst.msk [vmem:[%s1143_s3 + $0x90] sm:$0xff] %vm451_vm1, %v405_v4  ;;  %v312_v5 = vpop.f32.mrf.mxu2  ;;  %v352_v6 = vpop.f32.mrf.mxu3 }
  0xa0   :  { %v313_v7 = vadd.f32 %v818_v38, %v312_v5  ;;  %v353_v8 = vadd.f32 %v818_v38, %v352_v6  ;;  %v234_v9 = vpop.f32.mrf.mxu0  ;;  %v274_v10 = vpop.f32.mrf.mxu1 }
  0xa1   :  { %v235_v11 = vadd.f32 %v818_v38, %v234_v9  ;;  %v275_v12 = vadd.f32 %v818_v38, %v274_v10 }
  0xa2   :  { %v421_v13 = vmax.f32 %v313_v7, 0.0  ;;  %v437_v14 = vmax.f32 %v353_v8, 0.0 }
  0xa3   :  { %v390_v15 = vmax.f32 %v235_v11, 0.0  ;;  %v406_v16 = vmax.f32 %v275_v12, 0.0 }
  0xa4   :  { %486 = vst.msk [vmem:[%s1143_s3 + $0x110] sm:$0xff] %vm451_vm1, %v421_v13 }
  0xa5   :  { %502 = vst.msk [vmem:[%s1143_s3 + $0x190] sm:$0xff] %vm451_vm1, %v437_v14 }
  0xa6   :  { %455 = vst.msk [vmem:[%s1143_s3 + $0x18] sm:$0xff] %vm451_vm1, %v390_v15 }
  0xa7   :  { %471 = vst.msk [vmem:[%s1143_s3 + $0x98] sm:$0xff] %vm451_vm1, %v406_v16  ;;  %v314_v17 = vpop.f32.mrf.mxu2  ;;  %v354_v18 = vpop.f32.mrf.mxu3 }
  0xa8   :  { %v315_v19 = vadd.f32 %v818_v38, %v314_v17  ;;  %v355_v20 = vadd.f32 %v818_v38, %v354_v18  ;;  %v237_v21 = vpop.f32.mrf.mxu0  ;;  %v277_v22 = vpop.f32.mrf.mxu1 }
  0xa9   :  { %v238_v23 = vadd.f32 %v818_v38, %v237_v21  ;;  %v278_v24 = vadd.f32 %v818_v38, %v277_v22 }
  0xaa   :  { %v422_v25 = vmax.f32 %v315_v19, 0.0  ;;  %v438_v26 = vmax.f32 %v355_v20, 0.0 }
  0xab   :  { %v391_v27 = vmax.f32 %v238_v23, 0.0  ;;  %v407_v28 = vmax.f32 %v278_v24, 0.0 }
  0xac   :  { %487 = vst.msk [vmem:[%s1143_s3 + $0x118] sm:$0xff] %vm451_vm1, %v422_v25 }
  0xad   :  { %503 = vst.msk [vmem:[%s1143_s3 + $0x198] sm:$0xff] %vm451_vm1, %v438_v26 }
  0xae   :  { %456 = vst.msk [vmem:[%s1143_s3 + $0x20] sm:$0xff] %vm451_vm1, %v391_v27 }
  0xaf   :  { %472 = vst.msk [vmem:[%s1143_s3 + $0xa0] sm:$0xff] %vm451_vm1, %v407_v28  ;;  %v317_v29 = vpop.f32.mrf.mxu2  ;;  %v357_v30 = vpop.f32.mrf.mxu3 }
  0xb0   :  { %v318_v31 = vadd.f32 %v818_v38, %v317_v29  ;;  %v358_v32 = vadd.f32 %v818_v38, %v357_v30  ;;  %v239_v33 = vpop.f32.mrf.mxu0  ;;  %v279_v34 = vpop.f32.mrf.mxu1 }
  0xb1   :  { %v240_v35 = vadd.f32 %v818_v38, %v239_v33  ;;  %v280_v36 = vadd.f32 %v818_v38, %v279_v34 }
  0xb2   :  { %v423_v37 = vmax.f32 %v318_v31, 0.0  ;;  %v439_v39 = vmax.f32 %v358_v32, 0.0 }
  0xb3   :  { %v392_v40 = vmax.f32 %v240_v35, 0.0  ;;  %v408_v41 = vmax.f32 %v280_v36, 0.0 }
  0xb4   :  { %488 = vst.msk [vmem:[%s1143_s3 + $0x120] sm:$0xff] %vm451_vm1, %v423_v37 }
  0xb5   :  { %504 = vst.msk [vmem:[%s1143_s3 + $0x1a0] sm:$0xff] %vm451_vm1, %v439_v39 }
  0xb6   :  { %457 = vst.msk [vmem:[%s1143_s3 + $0x28] sm:$0xff] %vm451_vm1, %v392_v40 }
  0xb7   :  { %473 = vst.msk [vmem:[%s1143_s3 + $0xa8] sm:$0xff] %vm451_vm1, %v408_v41  ;;  %v319_v42 = vpop.f32.mrf.mxu2  ;;  %v359_v43 = vpop.f32.mrf.mxu3 }
  0xb8   :  { %v320_v44 = vadd.f32 %v818_v38, %v319_v42  ;;  %v360_v45 = vadd.f32 %v818_v38, %v359_v43  ;;  %v242_v46 = vpop.f32.mrf.mxu0  ;;  %v282_v47 = vpop.f32.mrf.mxu1 }
  0xb9   :  { %v243_v48 = vadd.f32 %v818_v38, %v242_v46  ;;  %v283_v49 = vadd.f32 %v818_v38, %v282_v47 }
  0xba   :  { %v424_v50 = vmax.f32 %v320_v44, 0.0  ;;  %v440_v51 = vmax.f32 %v360_v45, 0.0 }
  0xbb   :  { %v393_v52 = vmax.f32 %v243_v48, 0.0  ;;  %v409_v53 = vmax.f32 %v283_v49, 0.0 }
  0xbc   :  { %489 = vst.msk [vmem:[%s1143_s3 + $0x128] sm:$0xff] %vm451_vm1, %v424_v50 }
  0xbd   :  { %505 = vst.msk [vmem:[%s1143_s3 + $0x1a8] sm:$0xff] %vm451_vm1, %v440_v51 }
  0xbe   :  { %458 = vst.msk [vmem:[%s1143_s3 + $0x30] sm:$0xff] %vm451_vm1, %v393_v52 }
  0xbf   :  { %474 = vst.msk [vmem:[%s1143_s3 + $0xb0] sm:$0xff] %vm451_vm1, %v409_v53  ;;  %v322_v54 = vpop.f32.mrf.mxu2  ;;  %v362_v55 = vpop.f32.mrf.mxu3 }
  0xc0   :  { %v323_v56 = vadd.f32 %v818_v38, %v322_v54  ;;  %v363_v57 = vadd.f32 %v818_v38, %v362_v55  ;;  %v244_v58 = vpop.f32.mrf.mxu0  ;;  %v284_v59 = vpop.f32.mrf.mxu1 }
  0xc1   :  { %v245_v60 = vadd.f32 %v818_v38, %v244_v58  ;;  %v285_v61 = vadd.f32 %v818_v38, %v284_v59 }
  0xc2   :  { %v425_v62 = vmax.f32 %v323_v56, 0.0  ;;  %v441_v63 = vmax.f32 %v363_v57, 0.0 }
  0xc3   :  { %v394_v0 = vmax.f32 %v245_v60, 0.0  ;;  %v410_v1 = vmax.f32 %v285_v61, 0.0 }
  0xc4   :  { %490 = vst.msk [vmem:[%s1143_s3 + $0x130] sm:$0xff] %vm451_vm1, %v425_v62 }
  0xc5   :  { %506 = vst.msk [vmem:[%s1143_s3 + $0x1b0] sm:$0xff] %vm451_vm1, %v441_v63 }
  0xc6   :  { %459 = vst.msk [vmem:[%s1143_s3 + $0x38] sm:$0xff] %vm451_vm1, %v394_v0 }
  0xc7   :  { %475 = vst.msk [vmem:[%s1143_s3 + $0xb8] sm:$0xff] %vm451_vm1, %v410_v1  ;;  %v324_v2 = vpop.f32.mrf.mxu2  ;;  %v364_v3 = vpop.f32.mrf.mxu3 }
  0xc8   :  { %v325_v4 = vadd.f32 %v818_v38, %v324_v2  ;;  %v365_v5 = vadd.f32 %v818_v38, %v364_v3  ;;  %v247_v6 = vpop.f32.mrf.mxu0  ;;  %v287_v7 = vpop.f32.mrf.mxu1 }
  0xc9   :  { %v248_v8 = vadd.f32 %v818_v38, %v247_v6  ;;  %v288_v9 = vadd.f32 %v818_v38, %v287_v7 }
  0xca   :  { %v426_v10 = vmax.f32 %v325_v4, 0.0  ;;  %v442_v11 = vmax.f32 %v365_v5, 0.0 }
  0xcb   :  { %v395_v12 = vmax.f32 %v248_v8, 0.0  ;;  %v411_v13 = vmax.f32 %v288_v9, 0.0 }
  0xcc   :  { %491 = vst.msk [vmem:[%s1143_s3 + $0x138] sm:$0xff] %vm451_vm1, %v426_v10 }
  0xcd   :  { %507 = vst.msk [vmem:[%s1143_s3 + $0x1b8] sm:$0xff] %vm451_vm1, %v442_v11 }
  0xce   :  { %460 = vst.msk [vmem:[%s1143_s3 + $0x40] sm:$0xff] %vm451_vm1, %v395_v12 }
  0xcf   :  { %476 = vst.msk [vmem:[%s1143_s3 + $0xc0] sm:$0xff] %vm451_vm1, %v411_v13  ;;  %v327_v14 = vpop.f32.mrf.mxu2  ;;  %v367_v15 = vpop.f32.mrf.mxu3 }
  0xd0   :  { %v328_v16 = vadd.f32 %v818_v38, %v327_v14  ;;  %v368_v17 = vadd.f32 %v818_v38, %v367_v15  ;;  %v249_v18 = vpop.f32.mrf.mxu0  ;;  %v289_v19 = vpop.f32.mrf.mxu1 }
  0xd1   :  { %v250_v20 = vadd.f32 %v818_v38, %v249_v18  ;;  %v290_v21 = vadd.f32 %v818_v38, %v289_v19 }
  0xd2   :  { %v427_v22 = vmax.f32 %v328_v16, 0.0  ;;  %v443_v23 = vmax.f32 %v368_v17, 0.0 }
  0xd3   :  { %v396_v24 = vmax.f32 %v250_v20, 0.0  ;;  %v412_v25 = vmax.f32 %v290_v21, 0.0 }
  0xd4   :  { %492 = vst.msk [vmem:[%s1143_s3 + $0x140] sm:$0xff] %vm451_vm1, %v427_v22 }
  0xd5   :  { %508 = vst.msk [vmem:[%s1143_s3 + $0x1c0] sm:$0xff] %vm451_vm1, %v443_v23 }
  0xd6   :  { %461 = vst.msk [vmem:[%s1143_s3 + $0x48] sm:$0xff] %vm451_vm1, %v396_v24 }
  0xd7   :  { %477 = vst.msk [vmem:[%s1143_s3 + $0xc8] sm:$0xff] %vm451_vm1, %v412_v25  ;;  %v329_v26 = vpop.f32.mrf.mxu2  ;;  %v369_v27 = vpop.f32.mrf.mxu3 }
  0xd8   :  { %v330_v28 = vadd.f32 %v818_v38, %v329_v26  ;;  %v370_v29 = vadd.f32 %v818_v38, %v369_v27  ;;  %v252_v30 = vpop.f32.mrf.mxu0  ;;  %v292_v31 = vpop.f32.mrf.mxu1 }
  0xd9   :  { %v253_v32 = vadd.f32 %v818_v38, %v252_v30  ;;  %v293_v33 = vadd.f32 %v818_v38, %v292_v31 }
  0xda   :  { %v428_v34 = vmax.f32 %v330_v28, 0.0  ;;  %v444_v35 = vmax.f32 %v370_v29, 0.0 }
  0xdb   :  { %v397_v36 = vmax.f32 %v253_v32, 0.0  ;;  %v413_v37 = vmax.f32 %v293_v33, 0.0 }
  0xdc   :  { %493 = vst.msk [vmem:[%s1143_s3 + $0x148] sm:$0xff] %vm451_vm1, %v428_v34 }
  0xdd   :  { %509 = vst.msk [vmem:[%s1143_s3 + $0x1c8] sm:$0xff] %vm451_vm1, %v444_v35 }
  0xde   :  { %462 = vst.msk [vmem:[%s1143_s3 + $0x50] sm:$0xff] %vm451_vm1, %v397_v36 }
  0xdf   :  { %478 = vst.msk [vmem:[%s1143_s3 + $0xd0] sm:$0xff] %vm451_vm1, %v413_v37  ;;  %v332_v39 = vpop.f32.mrf.mxu2  ;;  %v372_v40 = vpop.f32.mrf.mxu3 }
  0xe0   :  { %v333_v41 = vadd.f32 %v818_v38, %v332_v39  ;;  %v373_v42 = vadd.f32 %v818_v38, %v372_v40  ;;  %v254_v43 = vpop.f32.mrf.mxu0  ;;  %v294_v44 = vpop.f32.mrf.mxu1 }
  0xe1   :  { %v255_v45 = vadd.f32 %v818_v38, %v254_v43  ;;  %v295_v46 = vadd.f32 %v818_v38, %v294_v44 }
  0xe2   :  { %v429_v47 = vmax.f32 %v333_v41, 0.0  ;;  %v445_v48 = vmax.f32 %v373_v42, 0.0 }
  0xe3   :  { %v398_v49 = vmax.f32 %v255_v45, 0.0  ;;  %v414_v50 = vmax.f32 %v295_v46, 0.0 }
  0xe4   :  { %494 = vst.msk [vmem:[%s1143_s3 + $0x150] sm:$0xff] %vm451_vm1, %v429_v47 }
  0xe5   :  { %510 = vst.msk [vmem:[%s1143_s3 + $0x1d0] sm:$0xff] %vm451_vm1, %v445_v48 }
  0xe6   :  { %463 = vst.msk [vmem:[%s1143_s3 + $0x58] sm:$0xff] %vm451_vm1, %v398_v49 }
  0xe7   :  { %479 = vst.msk [vmem:[%s1143_s3 + $0xd8] sm:$0xff] %vm451_vm1, %v414_v50  ;;  %v334_v51 = vpop.f32.mrf.mxu2  ;;  %v374_v52 = vpop.f32.mrf.mxu3 }
  0xe8   :  { %v335_v53 = vadd.f32 %v818_v38, %v334_v51  ;;  %v375_v54 = vadd.f32 %v818_v38, %v374_v52  ;;  %v257_v55 = vpop.f32.mrf.mxu0  ;;  %v297_v56 = vpop.f32.mrf.mxu1 }
  0xe9   :  { %v258_v57 = vadd.f32 %v818_v38, %v257_v55  ;;  %v298_v58 = vadd.f32 %v818_v38, %v297_v56 }
  0xea   :  { %v430_v59 = vmax.f32 %v335_v53, 0.0  ;;  %v446_v60 = vmax.f32 %v375_v54, 0.0 }
  0xeb   :  { %v399_v61 = vmax.f32 %v258_v57, 0.0  ;;  %v415_v62 = vmax.f32 %v298_v58, 0.0 }
  0xec   :  { %495 = vst.msk [vmem:[%s1143_s3 + $0x158] sm:$0xff] %vm451_vm1, %v430_v59 }
  0xed   :  { %511 = vst.msk [vmem:[%s1143_s3 + $0x1d8] sm:$0xff] %vm451_vm1, %v446_v60 }
  0xee   :  { %464 = vst.msk [vmem:[%s1143_s3 + $0x60] sm:$0xff] %vm451_vm1, %v399_v61 }
  0xef   :  { %480 = vst.msk [vmem:[%s1143_s3 + $0xe0] sm:$0xff] %vm451_vm1, %v415_v62  ;;  %v337_v63 = vpop.f32.mrf.mxu2  ;;  %v377_v0 = vpop.f32.mrf.mxu3 }
  0xf0   :  { %v338_v1 = vadd.f32 %v818_v38, %v337_v63  ;;  %v378_v2 = vadd.f32 %v818_v38, %v377_v0  ;;  %v259_v3 = vpop.f32.mrf.mxu0  ;;  %v299_v4 = vpop.f32.mrf.mxu1 }
  0xf1   :  { %v260_v5 = vadd.f32 %v818_v38, %v259_v3  ;;  %v300_v6 = vadd.f32 %v818_v38, %v299_v4 }
  0xf2   :  { %v431_v7 = vmax.f32 %v338_v1, 0.0  ;;  %v447_v8 = vmax.f32 %v378_v2, 0.0 }
  0xf3   :  { %v400_v9 = vmax.f32 %v260_v5, 0.0  ;;  %v416_v10 = vmax.f32 %v300_v6, 0.0 }
  0xf4   :  { %496 = vst.msk [vmem:[%s1143_s3 + $0x160] sm:$0xff] %vm451_vm1, %v431_v7 }
  0xf5   :  { %512 = vst.msk [vmem:[%s1143_s3 + $0x1e0] sm:$0xff] %vm451_vm1, %v447_v8 }
  0xf6   :  { %465 = vst.msk [vmem:[%s1143_s3 + $0x68] sm:$0xff] %vm451_vm1, %v400_v9 }
  0xf7   :  { %481 = vst.msk [vmem:[%s1143_s3 + $0xe8] sm:$0xff] %vm451_vm1, %v416_v10  ;;  %v339_v11 = vpop.f32.mrf.mxu2  ;;  %v379_v12 = vpop.f32.mrf.mxu3 }
  0xf8   :  { %v340_v13 = vadd.f32 %v818_v38, %v339_v11  ;;  %v380_v14 = vadd.f32 %v818_v38, %v379_v12  ;;  %v262_v15 = vpop.f32.mrf.mxu0  ;;  %v302_v16 = vpop.f32.mrf.mxu1 }
  0xf9   :  { %v263_v17 = vadd.f32 %v818_v38, %v262_v15  ;;  %v303_v18 = vadd.f32 %v818_v38, %v302_v16 }
  0xfa   :  { %v432_v19 = vmax.f32 %v340_v13, 0.0  ;;  %v448_v20 = vmax.f32 %v380_v14, 0.0 }
  0xfb   :  { %v401_v21 = vmax.f32 %v263_v17, 0.0  ;;  %v417_v22 = vmax.f32 %v303_v18, 0.0 }
  0xfc   :  { %497 = vst.msk [vmem:[%s1143_s3 + $0x168] sm:$0xff] %vm451_vm1, %v432_v19 }
  0xfd   :  { %513 = vst.msk [vmem:[%s1143_s3 + $0x1e8] sm:$0xff] %vm451_vm1, %v448_v20 }
  0xfe   :  { %466 = vst.msk [vmem:[%s1143_s3 + $0x70] sm:$0xff] %vm451_vm1, %v401_v21 }
  0xff   :  { %482 = vst.msk [vmem:[%s1143_s3 + $0xf0] sm:$0xff] %vm451_vm1, %v417_v22  ;;  %v342_v23 = vpop.f32.mrf.mxu2  ;;  %v382_v24 = vpop.f32.mrf.mxu3 }
 0x100   :  { %v343_v25 = vadd.f32 %v818_v38, %v342_v23  ;;  %v383_v26 = vadd.f32 %v818_v38, %v382_v24  ;;  %v264_v27 = vpop.f32.mrf.mxu0  ;;  %v304_v28 = vpop.f32.mrf.mxu1 }
 0x101   :  { %v265_v29 = vadd.f32 %v818_v38, %v264_v27  ;;  %v305_v30 = vadd.f32 %v818_v38, %v304_v28 }
 0x102   :  { %v433_v31 = vmax.f32 %v343_v25, 0.0  ;;  %v449_v32 = vmax.f32 %v383_v26, 0.0 }
 0x103   :  { %v402_v33 = vmax.f32 %v265_v29, 0.0  ;;  %v418_v34 = vmax.f32 %v305_v30, 0.0 }
 0x104   :  { %498 = vst.msk [vmem:[%s1143_s3 + $0x170] sm:$0xff] %vm451_vm1, %v433_v31 }
 0x105   :  { %514 = vst.msk [vmem:[%s1143_s3 + $0x1f0] sm:$0xff] %vm451_vm1, %v449_v32 }
 0x106   :  { %467 = vst.msk [vmem:[%s1143_s3 + $0x78] sm:$0xff] %vm451_vm1, %v402_v33 }
 0x107   :  { %483 = vst.msk [vmem:[%s1143_s3 + $0xf8] sm:$0xff] %vm451_vm1, %v418_v34  ;;  %v344_v35 = vpop.f32.mrf.mxu2  ;;  %v384_v36 = vpop.f32.mrf.mxu3 }
 0x108   :  { %v345_v37 = vadd.f32 %v818_v38, %v344_v35  ;;  %v385_v39 = vadd.f32 %v818_v38, %v384_v36 }
 0x10a   :  { %v434_v40 = vmax.f32 %v345_v37, 0.0  ;;  %v450_v41 = vmax.f32 %v385_v39, 0.0 }
 0x10c   :  { %499 = vst.msk [vmem:[%s1143_s3 + $0x178] sm:$0xff] %vm451_vm1, %v434_v40 }
 0x10d   :  { %515 = vst.msk [vmem:[%s1143_s3 + $0x1f8] sm:$0xff] %vm451_vm1, %v450_v41 }

</bundles_post_ra>
